<compile_context>
chip_gen: v7x
topology: tpu7x:2x2x1
jax: 0.10.0
libtpu: 0.0.40
codegen_flags: <defaults>
</compile_context>

<pallas_src>
import jax
import jax.numpy as jnp
from jax.experimental import pallas as pl
from jax.experimental.pallas import tpu as pltpu

LANE = 128
DEFAULT_TILE_N = 8192   # batch rows (lanes) per grid step; multiple of 128


def _round_up(v, m):
    return ((v + m - 1) // m) * m


def _bsann_hip_kernel(x_ref,
                      w11_ref, w21_ref, w31_ref, w41_ref,
                      w12_ref, w22_ref, w32_ref, w42_ref,
                      w13_ref,
                      o_ref):
    """One (15, TILE_N) batch tile.

    x_ref : (15, TILE_N) f32 in VMEM  -- features on sublanes, batch on lanes.
    w*_ref: tiny weights in SMEM      -- read element-wise as scalars.
    o_ref : (1, TILE_N)  f32 in VMEM  -- lane-dense output slab.
    """
    relu = lambda v: jnp.maximum(v, 0.0)

    # Load each feature row once: (1, TILE_N), fully lane-dense.
    rows = [x_ref[k:k + 1, :] for k in range(15)]

    def group(first_feat, n_feats, w1_ref, w2_ref):
        # hidden_j = relu(sum_k x_k * w1[k, j])  (j = 0..2)
        # out      = relu(sum_j hidden_j * w2[j, 0])
        out = None
        for j in range(3):
            h = None
            for k in range(n_feats):
                term = rows[first_feat + k] * w1_ref[k, j]
                h = term if h is None else h + term
            h = relu(h)
            t = h * w2_ref[j, 0]
            out = t if out is None else out + t
        return relu(out)                               # (1, TILE_N)

    g1 = group(0, 4, w11_ref, w12_ref)
    g2 = group(4, 4, w21_ref, w22_ref)
    g3 = group(8, 4, w31_ref, w32_ref)
    g4 = group(12, 3, w41_ref, w42_ref)

    # cat((x12,x22,x32,x42)) @ w13  ==  sum_i g_i * w13[i, 0]
    y_lin = (g1 * w13_ref[0, 0] + g2 * w13_ref[1, 0]
             + g3 * w13_ref[2, 0] + g4 * w13_ref[3, 0])
    o_ref[...] = jax.nn.sigmoid(y_lin)                 # lane-dense store


def bsann_hip_forward(x, params, *, tile_n=DEFAULT_TILE_N, interpret=False):
    """x: (N, 15) float32; params: dict of weights matching the torch module.

    Returns (N, 1) float32 (same as the PyTorch forward).
    """
    n, f = x.shape
    assert f == 15, "BSANN_Hip expects 15 input features"

    n_pad = _round_up(n, LANE)
    tile_n = _round_up(min(tile_n, n_pad), LANE)

    # Transpose once in the wrapper to the feature-major layout the kernel
    # wants (batch on the lane axis). Pad batch to a lane multiple with zeros.
    # TODO(synk): if the data producer can emit (15, N) / bf16 directly, the
    # transpose (and half the HBM read) disappears entirely.
    xt = jnp.pad(x.astype(jnp.float32), ((0, n_pad - n), (0, 0))).T  # (15, n_pad)

    weights = (params["w11"], params["w21"], params["w31"], params["w41"],
               params["w12"], params["w22"], params["w32"], params["w42"],
               params["w13"])

    grid = (pl.cdiv(n_pad, tile_n),)
    x_spec = pl.BlockSpec((15, tile_n), lambda i: (0, i))
    w_spec = pl.BlockSpec(memory_space=pltpu.MemorySpace.SMEM)  # whole array, once
    out_spec = pl.BlockSpec((1, tile_n), lambda i: (0, i))

    yt = pl.pallas_call(
        _bsann_hip_kernel,
        out_shape=jax.ShapeDtypeStruct((1, n_pad), jnp.float32),
        grid=grid,
        in_specs=[x_spec] + [w_spec] * len(weights),
        out_specs=out_spec,
        compiler_params=pltpu.CompilerParams(
            dimension_semantics=("parallel",),          # megacore on v7x
            vmem_limit_bytes=32 * 1024 * 1024,          # explicit, < v7x 64 MiB
        ),
        interpret=interpret,
    )(xt, *weights)

    return yt[0, :n].reshape(n, 1)


def init_params(key):
    shapes = {
        "w11": (4, 3), "w21": (4, 3), "w31": (4, 3), "w41": (3, 3),
        "w12": (3, 1), "w22": (3, 1), "w32": (3, 1), "w42": (3, 1),
        "w13": (4, 1),
    }
    keys = jax.random.split(key, len(shapes))
    return {name: jax.random.normal(k, shape, dtype=jnp.float32)
            for k, (name, shape) in zip(keys, shapes.items())}


def reference_forward(x, p):
    """Pure-JAX reference mirroring the torch code (for sanity check)."""
    xa, xb, xc, xd = x[:, 0:4], x[:, 4:8], x[:, 8:12], x[:, 12:15]
    r = lambda v: jnp.maximum(v, 0.0)
    x11, x21 = r(xa @ p["w11"]), r(xb @ p["w21"])
    x31, x41 = r(xc @ p["w31"]), r(xd @ p["w41"])
    x2 = jnp.concatenate([r(x11 @ p["w12"]), r(x21 @ p["w22"]),
                          r(x31 @ p["w32"]), r(x41 @ p["w42"])], axis=1)
    return jax.nn.sigmoid(x2 @ p["w13"])


if __name__ == "__main__":
    key = jax.random.PRNGKey(0)
    k_params, k_x1, k_x2 = jax.random.split(key, 3)

    params = init_params(k_params)

    # Small batch (pads to a single 128-lane tile).
    x1 = jax.random.normal(k_x1, (8, 15), dtype=jnp.float32)
    y1 = jax.block_until_ready(bsann_hip_forward(x1, params))
    assert y1.shape == (8, 1)
    assert jnp.allclose(y1, reference_forward(x1, params), atol=1e-5, rtol=1e-5)

    # Non-multiple-of-tile batch with a small forced tile to exercise the
    # grid (3 steps) and the partial final block's masked writeback.
    x2 = jax.random.normal(k_x2, (300, 15), dtype=jnp.float32)
    y2 = jax.block_until_ready(bsann_hip_forward(x2, params, tile_n=128))
    assert y2.shape == (300, 1)
    assert jnp.allclose(y2, reference_forward(x2, params), atol=1e-5, rtol=1e-5)

    print("KERNEL_OK")
</pallas_src>

<mosaic_0001>
module attributes {stable_mosaic.version = 11 : i64} {
  func.func @_bsann_hip_kernel(%arg0: i32, %arg1: memref<15x128xf32, #tpu.memory_space<vmem>>, %arg2: memref<4x3xf32, #tpu.memory_space<smem>>, %arg3: memref<4x3xf32, #tpu.memory_space<smem>>, %arg4: memref<4x3xf32, #tpu.memory_space<smem>>, %arg5: memref<3x3xf32, #tpu.memory_space<smem>>, %arg6: memref<3x1xf32, #tpu.memory_space<smem>>, %arg7: memref<3x1xf32, #tpu.memory_space<smem>>, %arg8: memref<3x1xf32, #tpu.memory_space<smem>>, %arg9: memref<3x1xf32, #tpu.memory_space<smem>>, %arg10: memref<4x1xf32, #tpu.memory_space<smem>>, %arg11: memref<1x128xf32, #tpu.memory_space<vmem>>) attributes {dimension_semantics = [#tpu.dimension_semantics<parallel>], iteration_bounds = array<i64: 1>, scalar_prefetch = 0 : i64, scratch_operands = 0 : i64, tpu.core_type = #tpu.core_type<tc>, window_params = [{transform_indices = @transform_0, window_bounds = array<i64: 15, 128>}, {transform_indices = @transform_1, window_bounds = array<i64: 4, 3>}, {transform_indices = @transform_2, window_bounds = array<i64: 4, 3>}, {transform_indices = @transform_3, window_bounds = array<i64: 4, 3>}, {transform_indices = @transform_4, window_bounds = array<i64: 3, 3>}, {transform_indices = @transform_5, window_bounds = array<i64: 3, 1>}, {transform_indices = @transform_6, window_bounds = array<i64: 3, 1>}, {transform_indices = @transform_7, window_bounds = array<i64: 3, 1>}, {transform_indices = @transform_8, window_bounds = array<i64: 3, 1>}, {transform_indices = @transform_9, window_bounds = array<i64: 4, 1>}, {transform_indices = @transform_10, window_bounds = array<i64: 1, 128>}]} {
    %c0 = arith.constant 0 : index
    %c0_0 = arith.constant 0 : index
    %0 = vector.load %arg1[%c0, %c0_0] : memref<15x128xf32, #tpu.memory_space<vmem>>, vector<1x128xf32>
    %c1 = arith.constant 1 : index
    %c0_1 = arith.constant 0 : index
    %1 = vector.load %arg1[%c1, %c0_1] : memref<15x128xf32, #tpu.memory_space<vmem>>, vector<1x128xf32>
    %c2 = arith.constant 2 : index
    %c0_2 = arith.constant 0 : index
    %2 = vector.load %arg1[%c2, %c0_2] : memref<15x128xf32, #tpu.memory_space<vmem>>, vector<1x128xf32>
    %c3 = arith.constant 3 : index
    %c0_3 = arith.constant 0 : index
    %3 = vector.load %arg1[%c3, %c0_3] : memref<15x128xf32, #tpu.memory_space<vmem>>, vector<1x128xf32>
    %c4 = arith.constant 4 : index
    %c0_4 = arith.constant 0 : index
    %4 = vector.load %arg1[%c4, %c0_4] : memref<15x128xf32, #tpu.memory_space<vmem>>, vector<1x128xf32>
    %c5 = arith.constant 5 : index
    %c0_5 = arith.constant 0 : index
    %5 = vector.load %arg1[%c5, %c0_5] : memref<15x128xf32, #tpu.memory_space<vmem>>, vector<1x128xf32>
    %c6 = arith.constant 6 : index
    %c0_6 = arith.constant 0 : index
    %6 = vector.load %arg1[%c6, %c0_6] : memref<15x128xf32, #tpu.memory_space<vmem>>, vector<1x128xf32>
    %c7 = arith.constant 7 : index
    %c0_7 = arith.constant 0 : index
    %7 = vector.load %arg1[%c7, %c0_7] : memref<15x128xf32, #tpu.memory_space<vmem>>, vector<1x128xf32>
    %c8 = arith.constant 8 : index
    %c0_8 = arith.constant 0 : index
    %8 = vector.load %arg1[%c8, %c0_8] : memref<15x128xf32, #tpu.memory_space<vmem>>, vector<1x128xf32>
    %c9 = arith.constant 9 : index
    %c0_9 = arith.constant 0 : index
    %9 = vector.load %arg1[%c9, %c0_9] : memref<15x128xf32, #tpu.memory_space<vmem>>, vector<1x128xf32>
    %c10 = arith.constant 10 : index
    %c0_10 = arith.constant 0 : index
    %10 = vector.load %arg1[%c10, %c0_10] : memref<15x128xf32, #tpu.memory_space<vmem>>, vector<1x128xf32>
    %c11 = arith.constant 11 : index
    %c0_11 = arith.constant 0 : index
    %11 = vector.load %arg1[%c11, %c0_11] : memref<15x128xf32, #tpu.memory_space<vmem>>, vector<1x128xf32>
    %c12 = arith.constant 12 : index
    %c0_12 = arith.constant 0 : index
    %12 = vector.load %arg1[%c12, %c0_12] : memref<15x128xf32, #tpu.memory_space<vmem>>, vector<1x128xf32>
    %c13 = arith.constant 13 : index
    %c0_13 = arith.constant 0 : index
    %13 = vector.load %arg1[%c13, %c0_13] : memref<15x128xf32, #tpu.memory_space<vmem>>, vector<1x128xf32>
    %c14 = arith.constant 14 : index
    %c0_14 = arith.constant 0 : index
    %14 = vector.load %arg1[%c14, %c0_14] : memref<15x128xf32, #tpu.memory_space<vmem>>, vector<1x128xf32>
    %c0_15 = arith.constant 0 : index
    %c0_16 = arith.constant 0 : index
    %15 = memref.load %arg2[%c0_15, %c0_16] : memref<4x3xf32, #tpu.memory_space<smem>>
    %16 = vector.broadcast %15 : f32 to vector<1x128xf32>
    %17 = arith.mulf %0, %16 : vector<1x128xf32>
    %c1_17 = arith.constant 1 : index
    %c0_18 = arith.constant 0 : index
    %18 = memref.load %arg2[%c1_17, %c0_18] : memref<4x3xf32, #tpu.memory_space<smem>>
    %19 = vector.broadcast %18 : f32 to vector<1x128xf32>
    %20 = arith.mulf %1, %19 : vector<1x128xf32>
    %21 = arith.addf %17, %20 : vector<1x128xf32>
    %c2_19 = arith.constant 2 : index
    %c0_20 = arith.constant 0 : index
    %22 = memref.load %arg2[%c2_19, %c0_20] : memref<4x3xf32, #tpu.memory_space<smem>>
    %23 = vector.broadcast %22 : f32 to vector<1x128xf32>
    %24 = arith.mulf %2, %23 : vector<1x128xf32>
    %25 = arith.addf %21, %24 : vector<1x128xf32>
    %c3_21 = arith.constant 3 : index
    %c0_22 = arith.constant 0 : index
    %26 = memref.load %arg2[%c3_21, %c0_22] : memref<4x3xf32, #tpu.memory_space<smem>>
    %27 = vector.broadcast %26 : f32 to vector<1x128xf32>
    %28 = arith.mulf %3, %27 : vector<1x128xf32>
    %29 = arith.addf %25, %28 : vector<1x128xf32>
    %cst = arith.constant 0.000000e+00 : f32
    %30 = vector.broadcast %cst : f32 to vector<1x128xf32>
    %31 = arith.maximumf %29, %30 : vector<1x128xf32>
    %c0_23 = arith.constant 0 : index
    %c0_24 = arith.constant 0 : index
    %32 = memref.load %arg6[%c0_23, %c0_24] : memref<3x1xf32, #tpu.memory_space<smem>>
    %33 = vector.broadcast %32 : f32 to vector<1x128xf32>
    %34 = arith.mulf %31, %33 : vector<1x128xf32>
    %c0_25 = arith.constant 0 : index
    %c1_26 = arith.constant 1 : index
    %35 = memref.load %arg2[%c0_25, %c1_26] : memref<4x3xf32, #tpu.memory_space<smem>>
    %36 = vector.broadcast %35 : f32 to vector<1x128xf32>
    %37 = arith.mulf %0, %36 : vector<1x128xf32>
    %c1_27 = arith.constant 1 : index
    %c1_28 = arith.constant 1 : index
    %38 = memref.load %arg2[%c1_27, %c1_28] : memref<4x3xf32, #tpu.memory_space<smem>>
    %39 = vector.broadcast %38 : f32 to vector<1x128xf32>
    %40 = arith.mulf %1, %39 : vector<1x128xf32>
    %41 = arith.addf %37, %40 : vector<1x128xf32>
    %c2_29 = arith.constant 2 : index
    %c1_30 = arith.constant 1 : index
    %42 = memref.load %arg2[%c2_29, %c1_30] : memref<4x3xf32, #tpu.memory_space<smem>>
    %43 = vector.broadcast %42 : f32 to vector<1x128xf32>
    %44 = arith.mulf %2, %43 : vector<1x128xf32>
    %45 = arith.addf %41, %44 : vector<1x128xf32>
    %c3_31 = arith.constant 3 : index
    %c1_32 = arith.constant 1 : index
    %46 = memref.load %arg2[%c3_31, %c1_32] : memref<4x3xf32, #tpu.memory_space<smem>>
    %47 = vector.broadcast %46 : f32 to vector<1x128xf32>
    %48 = arith.mulf %3, %47 : vector<1x128xf32>
    %49 = arith.addf %45, %48 : vector<1x128xf32>
    %cst_33 = arith.constant 0.000000e+00 : f32
    %50 = vector.broadcast %cst_33 : f32 to vector<1x128xf32>
    %51 = arith.maximumf %49, %50 : vector<1x128xf32>
    %c1_34 = arith.constant 1 : index
    %c0_35 = arith.constant 0 : index
    %52 = memref.load %arg6[%c1_34, %c0_35] : memref<3x1xf32, #tpu.memory_space<smem>>
    %53 = vector.broadcast %52 : f32 to vector<1x128xf32>
    %54 = arith.mulf %51, %53 : vector<1x128xf32>
    %55 = arith.addf %34, %54 : vector<1x128xf32>
    %c0_36 = arith.constant 0 : index
    %c2_37 = arith.constant 2 : index
    %56 = memref.load %arg2[%c0_36, %c2_37] : memref<4x3xf32, #tpu.memory_space<smem>>
    %57 = vector.broadcast %56 : f32 to vector<1x128xf32>
    %58 = arith.mulf %0, %57 : vector<1x128xf32>
    %c1_38 = arith.constant 1 : index
    %c2_39 = arith.constant 2 : index
    %59 = memref.load %arg2[%c1_38, %c2_39] : memref<4x3xf32, #tpu.memory_space<smem>>
    %60 = vector.broadcast %59 : f32 to vector<1x128xf32>
    %61 = arith.mulf %1, %60 : vector<1x128xf32>
    %62 = arith.addf %58, %61 : vector<1x128xf32>
    %c2_40 = arith.constant 2 : index
    %c2_41 = arith.constant 2 : index
    %63 = memref.load %arg2[%c2_40, %c2_41] : memref<4x3xf32, #tpu.memory_space<smem>>
    %64 = vector.broadcast %63 : f32 to vector<1x128xf32>
    %65 = arith.mulf %2, %64 : vector<1x128xf32>
    %66 = arith.addf %62, %65 : vector<1x128xf32>
    %c3_42 = arith.constant 3 : index
    %c2_43 = arith.constant 2 : index
    %67 = memref.load %arg2[%c3_42, %c2_43] : memref<4x3xf32, #tpu.memory_space<smem>>
    %68 = vector.broadcast %67 : f32 to vector<1x128xf32>
    %69 = arith.mulf %3, %68 : vector<1x128xf32>
    %70 = arith.addf %66, %69 : vector<1x128xf32>
    %cst_44 = arith.constant 0.000000e+00 : f32
    %71 = vector.broadcast %cst_44 : f32 to vector<1x128xf32>
    %72 = arith.maximumf %70, %71 : vector<1x128xf32>
    %c2_45 = arith.constant 2 : index
    %c0_46 = arith.constant 0 : index
    %73 = memref.load %arg6[%c2_45, %c0_46] : memref<3x1xf32, #tpu.memory_space<smem>>
    %74 = vector.broadcast %73 : f32 to vector<1x128xf32>
    %75 = arith.mulf %72, %74 : vector<1x128xf32>
    %76 = arith.addf %55, %75 : vector<1x128xf32>
    %cst_47 = arith.constant 0.000000e+00 : f32
    %77 = vector.broadcast %cst_47 : f32 to vector<1x128xf32>
    %78 = arith.maximumf %76, %77 : vector<1x128xf32>
    %c0_48 = arith.constant 0 : index
    %c0_49 = arith.constant 0 : index
    %79 = memref.load %arg3[%c0_48, %c0_49] : memref<4x3xf32, #tpu.memory_space<smem>>
    %80 = vector.broadcast %79 : f32 to vector<1x128xf32>
    %81 = arith.mulf %4, %80 : vector<1x128xf32>
    %c1_50 = arith.constant 1 : index
    %c0_51 = arith.constant 0 : index
    %82 = memref.load %arg3[%c1_50, %c0_51] : memref<4x3xf32, #tpu.memory_space<smem>>
    %83 = vector.broadcast %82 : f32 to vector<1x128xf32>
    %84 = arith.mulf %5, %83 : vector<1x128xf32>
    %85 = arith.addf %81, %84 : vector<1x128xf32>
    %c2_52 = arith.constant 2 : index
    %c0_53 = arith.constant 0 : index
    %86 = memref.load %arg3[%c2_52, %c0_53] : memref<4x3xf32, #tpu.memory_space<smem>>
    %87 = vector.broadcast %86 : f32 to vector<1x128xf32>
    %88 = arith.mulf %6, %87 : vector<1x128xf32>
    %89 = arith.addf %85, %88 : vector<1x128xf32>
    %c3_54 = arith.constant 3 : index
    %c0_55 = arith.constant 0 : index
    %90 = memref.load %arg3[%c3_54, %c0_55] : memref<4x3xf32, #tpu.memory_space<smem>>
    %91 = vector.broadcast %90 : f32 to vector<1x128xf32>
    %92 = arith.mulf %7, %91 : vector<1x128xf32>
    %93 = arith.addf %89, %92 : vector<1x128xf32>
    %cst_56 = arith.constant 0.000000e+00 : f32
    %94 = vector.broadcast %cst_56 : f32 to vector<1x128xf32>
    %95 = arith.maximumf %93, %94 : vector<1x128xf32>
    %c0_57 = arith.constant 0 : index
    %c0_58 = arith.constant 0 : index
    %96 = memref.load %arg7[%c0_57, %c0_58] : memref<3x1xf32, #tpu.memory_space<smem>>
    %97 = vector.broadcast %96 : f32 to vector<1x128xf32>
    %98 = arith.mulf %95, %97 : vector<1x128xf32>
    %c0_59 = arith.constant 0 : index
    %c1_60 = arith.constant 1 : index
    %99 = memref.load %arg3[%c0_59, %c1_60] : memref<4x3xf32, #tpu.memory_space<smem>>
    %100 = vector.broadcast %99 : f32 to vector<1x128xf32>
    %101 = arith.mulf %4, %100 : vector<1x128xf32>
    %c1_61 = arith.constant 1 : index
    %c1_62 = arith.constant 1 : index
    %102 = memref.load %arg3[%c1_61, %c1_62] : memref<4x3xf32, #tpu.memory_space<smem>>
    %103 = vector.broadcast %102 : f32 to vector<1x128xf32>
    %104 = arith.mulf %5, %103 : vector<1x128xf32>
    %105 = arith.addf %101, %104 : vector<1x128xf32>
    %c2_63 = arith.constant 2 : index
    %c1_64 = arith.constant 1 : index
    %106 = memref.load %arg3[%c2_63, %c1_64] : memref<4x3xf32, #tpu.memory_space<smem>>
    %107 = vector.broadcast %106 : f32 to vector<1x128xf32>
    %108 = arith.mulf %6, %107 : vector<1x128xf32>
    %109 = arith.addf %105, %108 : vector<1x128xf32>
    %c3_65 = arith.constant 3 : index
    %c1_66 = arith.constant 1 : index
    %110 = memref.load %arg3[%c3_65, %c1_66] : memref<4x3xf32, #tpu.memory_space<smem>>
    %111 = vector.broadcast %110 : f32 to vector<1x128xf32>
    %112 = arith.mulf %7, %111 : vector<1x128xf32>
    %113 = arith.addf %109, %112 : vector<1x128xf32>
    %cst_67 = arith.constant 0.000000e+00 : f32
    %114 = vector.broadcast %cst_67 : f32 to vector<1x128xf32>
    %115 = arith.maximumf %113, %114 : vector<1x128xf32>
    %c1_68 = arith.constant 1 : index
    %c0_69 = arith.constant 0 : index
    %116 = memref.load %arg7[%c1_68, %c0_69] : memref<3x1xf32, #tpu.memory_space<smem>>
    %117 = vector.broadcast %116 : f32 to vector<1x128xf32>
    %118 = arith.mulf %115, %117 : vector<1x128xf32>
    %119 = arith.addf %98, %118 : vector<1x128xf32>
    %c0_70 = arith.constant 0 : index
    %c2_71 = arith.constant 2 : index
    %120 = memref.load %arg3[%c0_70, %c2_71] : memref<4x3xf32, #tpu.memory_space<smem>>
    %121 = vector.broadcast %120 : f32 to vector<1x128xf32>
    %122 = arith.mulf %4, %121 : vector<1x128xf32>
    %c1_72 = arith.constant 1 : index
    %c2_73 = arith.constant 2 : index
    %123 = memref.load %arg3[%c1_72, %c2_73] : memref<4x3xf32, #tpu.memory_space<smem>>
    %124 = vector.broadcast %123 : f32 to vector<1x128xf32>
    %125 = arith.mulf %5, %124 : vector<1x128xf32>
    %126 = arith.addf %122, %125 : vector<1x128xf32>
    %c2_74 = arith.constant 2 : index
    %c2_75 = arith.constant 2 : index
    %127 = memref.load %arg3[%c2_74, %c2_75] : memref<4x3xf32, #tpu.memory_space<smem>>
    %128 = vector.broadcast %127 : f32 to vector<1x128xf32>
    %129 = arith.mulf %6, %128 : vector<1x128xf32>
    %130 = arith.addf %126, %129 : vector<1x128xf32>
    %c3_76 = arith.constant 3 : index
    %c2_77 = arith.constant 2 : index
    %131 = memref.load %arg3[%c3_76, %c2_77] : memref<4x3xf32, #tpu.memory_space<smem>>
    %132 = vector.broadcast %131 : f32 to vector<1x128xf32>
    %133 = arith.mulf %7, %132 : vector<1x128xf32>
    %134 = arith.addf %130, %133 : vector<1x128xf32>
    %cst_78 = arith.constant 0.000000e+00 : f32
    %135 = vector.broadcast %cst_78 : f32 to vector<1x128xf32>
    %136 = arith.maximumf %134, %135 : vector<1x128xf32>
    %c2_79 = arith.constant 2 : index
    %c0_80 = arith.constant 0 : index
    %137 = memref.load %arg7[%c2_79, %c0_80] : memref<3x1xf32, #tpu.memory_space<smem>>
    %138 = vector.broadcast %137 : f32 to vector<1x128xf32>
    %139 = arith.mulf %136, %138 : vector<1x128xf32>
    %140 = arith.addf %119, %139 : vector<1x128xf32>
    %cst_81 = arith.constant 0.000000e+00 : f32
    %141 = vector.broadcast %cst_81 : f32 to vector<1x128xf32>
    %142 = arith.maximumf %140, %141 : vector<1x128xf32>
    %c0_82 = arith.constant 0 : index
    %c0_83 = arith.constant 0 : index
    %143 = memref.load %arg4[%c0_82, %c0_83] : memref<4x3xf32, #tpu.memory_space<smem>>
    %144 = vector.broadcast %143 : f32 to vector<1x128xf32>
    %145 = arith.mulf %8, %144 : vector<1x128xf32>
    %c1_84 = arith.constant 1 : index
    %c0_85 = arith.constant 0 : index
    %146 = memref.load %arg4[%c1_84, %c0_85] : memref<4x3xf32, #tpu.memory_space<smem>>
    %147 = vector.broadcast %146 : f32 to vector<1x128xf32>
    %148 = arith.mulf %9, %147 : vector<1x128xf32>
    %149 = arith.addf %145, %148 : vector<1x128xf32>
    %c2_86 = arith.constant 2 : index
    %c0_87 = arith.constant 0 : index
    %150 = memref.load %arg4[%c2_86, %c0_87] : memref<4x3xf32, #tpu.memory_space<smem>>
    %151 = vector.broadcast %150 : f32 to vector<1x128xf32>
    %152 = arith.mulf %10, %151 : vector<1x128xf32>
    %153 = arith.addf %149, %152 : vector<1x128xf32>
    %c3_88 = arith.constant 3 : index
    %c0_89 = arith.constant 0 : index
    %154 = memref.load %arg4[%c3_88, %c0_89] : memref<4x3xf32, #tpu.memory_space<smem>>
    %155 = vector.broadcast %154 : f32 to vector<1x128xf32>
    %156 = arith.mulf %11, %155 : vector<1x128xf32>
    %157 = arith.addf %153, %156 : vector<1x128xf32>
    %cst_90 = arith.constant 0.000000e+00 : f32
    %158 = vector.broadcast %cst_90 : f32 to vector<1x128xf32>
    %159 = arith.maximumf %157, %158 : vector<1x128xf32>
    %c0_91 = arith.constant 0 : index
    %c0_92 = arith.constant 0 : index
    %160 = memref.load %arg8[%c0_91, %c0_92] : memref<3x1xf32, #tpu.memory_space<smem>>
    %161 = vector.broadcast %160 : f32 to vector<1x128xf32>
    %162 = arith.mulf %159, %161 : vector<1x128xf32>
    %c0_93 = arith.constant 0 : index
    %c1_94 = arith.constant 1 : index
    %163 = memref.load %arg4[%c0_93, %c1_94] : memref<4x3xf32, #tpu.memory_space<smem>>
    %164 = vector.broadcast %163 : f32 to vector<1x128xf32>
    %165 = arith.mulf %8, %164 : vector<1x128xf32>
    %c1_95 = arith.constant 1 : index
    %c1_96 = arith.constant 1 : index
    %166 = memref.load %arg4[%c1_95, %c1_96] : memref<4x3xf32, #tpu.memory_space<smem>>
    %167 = vector.broadcast %166 : f32 to vector<1x128xf32>
    %168 = arith.mulf %9, %167 : vector<1x128xf32>
    %169 = arith.addf %165, %168 : vector<1x128xf32>
    %c2_97 = arith.constant 2 : index
    %c1_98 = arith.constant 1 : index
    %170 = memref.load %arg4[%c2_97, %c1_98] : memref<4x3xf32, #tpu.memory_space<smem>>
    %171 = vector.broadcast %170 : f32 to vector<1x128xf32>
    %172 = arith.mulf %10, %171 : vector<1x128xf32>
    %173 = arith.addf %169, %172 : vector<1x128xf32>
    %c3_99 = arith.constant 3 : index
    %c1_100 = arith.constant 1 : index
    %174 = memref.load %arg4[%c3_99, %c1_100] : memref<4x3xf32, #tpu.memory_space<smem>>
    %175 = vector.broadcast %174 : f32 to vector<1x128xf32>
    %176 = arith.mulf %11, %175 : vector<1x128xf32>
    %177 = arith.addf %173, %176 : vector<1x128xf32>
    %cst_101 = arith.constant 0.000000e+00 : f32
    %178 = vector.broadcast %cst_101 : f32 to vector<1x128xf32>
    %179 = arith.maximumf %177, %178 : vector<1x128xf32>
    %c1_102 = arith.constant 1 : index
    %c0_103 = arith.constant 0 : index
    %180 = memref.load %arg8[%c1_102, %c0_103] : memref<3x1xf32, #tpu.memory_space<smem>>
    %181 = vector.broadcast %180 : f32 to vector<1x128xf32>
    %182 = arith.mulf %179, %181 : vector<1x128xf32>
    %183 = arith.addf %162, %182 : vector<1x128xf32>
    %c0_104 = arith.constant 0 : index
    %c2_105 = arith.constant 2 : index
    %184 = memref.load %arg4[%c0_104, %c2_105] : memref<4x3xf32, #tpu.memory_space<smem>>
    %185 = vector.broadcast %184 : f32 to vector<1x128xf32>
    %186 = arith.mulf %8, %185 : vector<1x128xf32>
    %c1_106 = arith.constant 1 : index
    %c2_107 = arith.constant 2 : index
    %187 = memref.load %arg4[%c1_106, %c2_107] : memref<4x3xf32, #tpu.memory_space<smem>>
    %188 = vector.broadcast %187 : f32 to vector<1x128xf32>
    %189 = arith.mulf %9, %188 : vector<1x128xf32>
    %190 = arith.addf %186, %189 : vector<1x128xf32>
    %c2_108 = arith.constant 2 : index
    %c2_109 = arith.constant 2 : index
    %191 = memref.load %arg4[%c2_108, %c2_109] : memref<4x3xf32, #tpu.memory_space<smem>>
    %192 = vector.broadcast %191 : f32 to vector<1x128xf32>
    %193 = arith.mulf %10, %192 : vector<1x128xf32>
    %194 = arith.addf %190, %193 : vector<1x128xf32>
    %c3_110 = arith.constant 3 : index
    %c2_111 = arith.constant 2 : index
    %195 = memref.load %arg4[%c3_110, %c2_111] : memref<4x3xf32, #tpu.memory_space<smem>>
    %196 = vector.broadcast %195 : f32 to vector<1x128xf32>
    %197 = arith.mulf %11, %196 : vector<1x128xf32>
    %198 = arith.addf %194, %197 : vector<1x128xf32>
    %cst_112 = arith.constant 0.000000e+00 : f32
    %199 = vector.broadcast %cst_112 : f32 to vector<1x128xf32>
    %200 = arith.maximumf %198, %199 : vector<1x128xf32>
    %c2_113 = arith.constant 2 : index
    %c0_114 = arith.constant 0 : index
    %201 = memref.load %arg8[%c2_113, %c0_114] : memref<3x1xf32, #tpu.memory_space<smem>>
    %202 = vector.broadcast %201 : f32 to vector<1x128xf32>
    %203 = arith.mulf %200, %202 : vector<1x128xf32>
    %204 = arith.addf %183, %203 : vector<1x128xf32>
    %cst_115 = arith.constant 0.000000e+00 : f32
    %205 = vector.broadcast %cst_115 : f32 to vector<1x128xf32>
    %206 = arith.maximumf %204, %205 : vector<1x128xf32>
    %c0_116 = arith.constant 0 : index
    %c0_117 = arith.constant 0 : index
    %207 = memref.load %arg5[%c0_116, %c0_117] : memref<3x3xf32, #tpu.memory_space<smem>>
    %208 = vector.broadcast %207 : f32 to vector<1x128xf32>
    %209 = arith.mulf %12, %208 : vector<1x128xf32>
    %c1_118 = arith.constant 1 : index
    %c0_119 = arith.constant 0 : index
    %210 = memref.load %arg5[%c1_118, %c0_119] : memref<3x3xf32, #tpu.memory_space<smem>>
    %211 = vector.broadcast %210 : f32 to vector<1x128xf32>
    %212 = arith.mulf %13, %211 : vector<1x128xf32>
    %213 = arith.addf %209, %212 : vector<1x128xf32>
    %c2_120 = arith.constant 2 : index
    %c0_121 = arith.constant 0 : index
    %214 = memref.load %arg5[%c2_120, %c0_121] : memref<3x3xf32, #tpu.memory_space<smem>>
    %215 = vector.broadcast %214 : f32 to vector<1x128xf32>
    %216 = arith.mulf %14, %215 : vector<1x128xf32>
    %217 = arith.addf %213, %216 : vector<1x128xf32>
    %cst_122 = arith.constant 0.000000e+00 : f32
    %218 = vector.broadcast %cst_122 : f32 to vector<1x128xf32>
    %219 = arith.maximumf %217, %218 : vector<1x128xf32>
    %c0_123 = arith.constant 0 : index
    %c0_124 = arith.constant 0 : index
    %220 = memref.load %arg9[%c0_123, %c0_124] : memref<3x1xf32, #tpu.memory_space<smem>>
    %221 = vector.broadcast %220 : f32 to vector<1x128xf32>
    %222 = arith.mulf %219, %221 : vector<1x128xf32>
    %c0_125 = arith.constant 0 : index
    %c1_126 = arith.constant 1 : index
    %223 = memref.load %arg5[%c0_125, %c1_126] : memref<3x3xf32, #tpu.memory_space<smem>>
    %224 = vector.broadcast %223 : f32 to vector<1x128xf32>
    %225 = arith.mulf %12, %224 : vector<1x128xf32>
    %c1_127 = arith.constant 1 : index
    %c1_128 = arith.constant 1 : index
    %226 = memref.load %arg5[%c1_127, %c1_128] : memref<3x3xf32, #tpu.memory_space<smem>>
    %227 = vector.broadcast %226 : f32 to vector<1x128xf32>
    %228 = arith.mulf %13, %227 : vector<1x128xf32>
    %229 = arith.addf %225, %228 : vector<1x128xf32>
    %c2_129 = arith.constant 2 : index
    %c1_130 = arith.constant 1 : index
    %230 = memref.load %arg5[%c2_129, %c1_130] : memref<3x3xf32, #tpu.memory_space<smem>>
    %231 = vector.broadcast %230 : f32 to vector<1x128xf32>
    %232 = arith.mulf %14, %231 : vector<1x128xf32>
    %233 = arith.addf %229, %232 : vector<1x128xf32>
    %cst_131 = arith.constant 0.000000e+00 : f32
    %234 = vector.broadcast %cst_131 : f32 to vector<1x128xf32>
    %235 = arith.maximumf %233, %234 : vector<1x128xf32>
    %c1_132 = arith.constant 1 : index
    %c0_133 = arith.constant 0 : index
    %236 = memref.load %arg9[%c1_132, %c0_133] : memref<3x1xf32, #tpu.memory_space<smem>>
    %237 = vector.broadcast %236 : f32 to vector<1x128xf32>
    %238 = arith.mulf %235, %237 : vector<1x128xf32>
    %239 = arith.addf %222, %238 : vector<1x128xf32>
    %c0_134 = arith.constant 0 : index
    %c2_135 = arith.constant 2 : index
    %240 = memref.load %arg5[%c0_134, %c2_135] : memref<3x3xf32, #tpu.memory_space<smem>>
    %241 = vector.broadcast %240 : f32 to vector<1x128xf32>
    %242 = arith.mulf %12, %241 : vector<1x128xf32>
    %c1_136 = arith.constant 1 : index
    %c2_137 = arith.constant 2 : index
    %243 = memref.load %arg5[%c1_136, %c2_137] : memref<3x3xf32, #tpu.memory_space<smem>>
    %244 = vector.broadcast %243 : f32 to vector<1x128xf32>
    %245 = arith.mulf %13, %244 : vector<1x128xf32>
    %246 = arith.addf %242, %245 : vector<1x128xf32>
    %c2_138 = arith.constant 2 : index
    %c2_139 = arith.constant 2 : index
    %247 = memref.load %arg5[%c2_138, %c2_139] : memref<3x3xf32, #tpu.memory_space<smem>>
    %248 = vector.broadcast %247 : f32 to vector<1x128xf32>
    %249 = arith.mulf %14, %248 : vector<1x128xf32>
    %250 = arith.addf %246, %249 : vector<1x128xf32>
    %cst_140 = arith.constant 0.000000e+00 : f32
    %251 = vector.broadcast %cst_140 : f32 to vector<1x128xf32>
    %252 = arith.maximumf %250, %251 : vector<1x128xf32>
    %c2_141 = arith.constant 2 : index
    %c0_142 = arith.constant 0 : index
    %253 = memref.load %arg9[%c2_141, %c0_142] : memref<3x1xf32, #tpu.memory_space<smem>>
    %254 = vector.broadcast %253 : f32 to vector<1x128xf32>
    %255 = arith.mulf %252, %254 : vector<1x128xf32>
    %256 = arith.addf %239, %255 : vector<1x128xf32>
    %cst_143 = arith.constant 0.000000e+00 : f32
    %257 = vector.broadcast %cst_143 : f32 to vector<1x128xf32>
    %258 = arith.maximumf %256, %257 : vector<1x128xf32>
    %c0_144 = arith.constant 0 : index
    %c0_145 = arith.constant 0 : index
    %259 = memref.load %arg10[%c0_144, %c0_145] : memref<4x1xf32, #tpu.memory_space<smem>>
    %260 = vector.broadcast %259 : f32 to vector<1x128xf32>
    %261 = arith.mulf %78, %260 : vector<1x128xf32>
    %c1_146 = arith.constant 1 : index
    %c0_147 = arith.constant 0 : index
    %262 = memref.load %arg10[%c1_146, %c0_147] : memref<4x1xf32, #tpu.memory_space<smem>>
    %263 = vector.broadcast %262 : f32 to vector<1x128xf32>
    %264 = arith.mulf %142, %263 : vector<1x128xf32>
    %265 = arith.addf %261, %264 : vector<1x128xf32>
    %c2_148 = arith.constant 2 : index
    %c0_149 = arith.constant 0 : index
    %266 = memref.load %arg10[%c2_148, %c0_149] : memref<4x1xf32, #tpu.memory_space<smem>>
    %267 = vector.broadcast %266 : f32 to vector<1x128xf32>
    %268 = arith.mulf %206, %267 : vector<1x128xf32>
    %269 = arith.addf %265, %268 : vector<1x128xf32>
    %c3_150 = arith.constant 3 : index
    %c0_151 = arith.constant 0 : index
    %270 = memref.load %arg10[%c3_150, %c0_151] : memref<4x1xf32, #tpu.memory_space<smem>>
    %271 = vector.broadcast %270 : f32 to vector<1x128xf32>
    %272 = arith.mulf %258, %271 : vector<1x128xf32>
    %273 = arith.addf %269, %272 : vector<1x128xf32>
    %274 = arith.negf %273 : vector<1x128xf32>
    %275 = math.exp %274 : vector<1x128xf32>
    %cst_152 = arith.constant 1.000000e+00 : f32
    %276 = vector.broadcast %cst_152 : f32 to vector<1x128xf32>
    %277 = arith.addf %276, %275 : vector<1x128xf32>
    %278 = arith.divf %276, %277 : vector<1x128xf32>
    %c0_153 = arith.constant 0 : index
    %c0_154 = arith.constant 0 : index
    %279 = vector.load %arg11[%c0_153, %c0_154] : memref<1x128xf32, #tpu.memory_space<vmem>>, vector<1x128xf32>
    tpu.vector_store %arg11[%c0_153, %c0_154], %278 {strides = array<i32>} : memref<1x128xf32, #tpu.memory_space<vmem>>, vector<1x128xf32>,
    return
  }
  func.func @transform_0(%arg0: i32) -> (i32, i32) {
    %c0_i32 = arith.constant 0 : i32
    %c0_i32_0 = arith.constant 0 : i32
    return %c0_i32, %arg0 : i32, i32
  }
  func.func @transform_1(%arg0: i32) -> (i32, i32) {
    %c0_i32 = arith.constant 0 : i32
    %c0_i32_0 = arith.constant 0 : i32
    %c0_i32_1 = arith.constant 0 : i32
    return %c0_i32, %c0_i32_0 : i32, i32
  }
  func.func @transform_2(%arg0: i32) -> (i32, i32) {
    %c0_i32 = arith.constant 0 : i32
    %c0_i32_0 = arith.constant 0 : i32
    %c0_i32_1 = arith.constant 0 : i32
    return %c0_i32, %c0_i32_0 : i32, i32
  }
  func.func @transform_3(%arg0: i32) -> (i32, i32) {
    %c0_i32 = arith.constant 0 : i32
    %c0_i32_0 = arith.constant 0 : i32
    %c0_i32_1 = arith.constant 0 : i32
    return %c0_i32, %c0_i32_0 : i32, i32
  }
  func.func @transform_4(%arg0: i32) -> (i32, i32) {
    %c0_i32 = arith.constant 0 : i32
    %c0_i32_0 = arith.constant 0 : i32
    %c0_i32_1 = arith.constant 0 : i32
    return %c0_i32, %c0_i32_0 : i32, i32
  }
  func.func @transform_5(%arg0: i32) -> (i32, i32) {
    %c0_i32 = arith.constant 0 : i32
    %c0_i32_0 = arith.constant 0 : i32
    %c0_i32_1 = arith.constant 0 : i32
    return %c0_i32, %c0_i32_0 : i32, i32
  }
  func.func @transform_6(%arg0: i32) -> (i32, i32) {
    %c0_i32 = arith.constant 0 : i32
    %c0_i32_0 = arith.constant 0 : i32
    %c0_i32_1 = arith.constant 0 : i32
    return %c0_i32, %c0_i32_0 : i32, i32
  }
  func.func @transform_7(%arg0: i32) -> (i32, i32) {
    %c0_i32 = arith.constant 0 : i32
    %c0_i32_0 = arith.constant 0 : i32
    %c0_i32_1 = arith.constant 0 : i32
    return %c0_i32, %c0_i32_0 : i32, i32
  }
  func.func @transform_8(%arg0: i32) -> (i32, i32) {
    %c0_i32 = arith.constant 0 : i32
    %c0_i32_0 = arith.constant 0 : i32
    %c0_i32_1 = arith.constant 0 : i32
    return %c0_i32, %c0_i32_0 : i32, i32
  }
  func.func @transform_9(%arg0: i32) -> (i32, i32) {
    %c0_i32 = arith.constant 0 : i32
    %c0_i32_0 = arith.constant 0 : i32
    %c0_i32_1 = arith.constant 0 : i32
    return %c0_i32, %c0_i32_0 : i32, i32
  }
  func.func @transform_10(%arg0: i32) -> (i32, i32) {
    %c0_i32 = arith.constant 0 : i32
    %c0_i32_0 = arith.constant 0 : i32
    return %c0_i32, %arg0 : i32, i32
  }
}

</mosaic_0001>

<bundles_post_ra>
// kernel: tpu_custom_call.1
= control target key start
LH: loop header
LB: loop body
LE: loop exit
PB: predicated region body
PF: predicated region fallthrough
CT: control target
= control target key end

     0   :  { %15 = vsyncpa [#allocation4], 0  ;;  %s972_s0 = inlined_call_operand.vmem [shape: f32[15,128], index: 0, kind: input, shape index: {}]   ;;  %s973_s1 = inlined_call_operand.vmem [shape: f32[4,3], index: 1, kind: input, shape index: {}]   ;;  %s974_s2 = inlined_call_operand.vmem [shape: f32[4,3], index: 2, kind: input, shape index: {}]   ;;  %s975_s3 = inlined_call_operand.vmem [shape: f32[4,3], index: 3, kind: input, shape index: {}]   ;;  %s976_s4 = inlined_call_operand.vmem [shape: f32[3,3], index: 4, kind: input, shape index: {}]   ;;  %s977_s5 = inlined_call_operand.vmem [shape: f32[3,1], index: 5, kind: input, shape index: {}]   ;;  %s978_s6 = inlined_call_operand.vmem [shape: f32[3,1], index: 6, kind: input, shape index: {}]   ;;  %s979_s7 = inlined_call_operand.vmem [shape: f32[3,1], index: 7, kind: input, shape index: {}]   ;;  %s980_s8 = inlined_call_operand.vmem [shape: f32[3,1], index: 8, kind: input, shape index: {}]   ;;  %s981_s9 = inlined_call_operand.vmem [shape: f32[4,1], index: 9, kind: input, shape index: {}]   ;;  %s982_s10 = inlined_call_operand.hbm [shape: f32[1,128], index: 10, kind: output, shape index: {}]  }
   0x1   :  { %16 = vsyncpa [#allocation6], 0 }
   0x2   :  { %17 = vsyncpa [#allocation9], 0 }
   0x3   :  { %18 = vsyncpa [#allocation12], 0 }
   0x4   :  { %19 = vsyncpa [#allocation15], 0  ;;  %s39_s15 = sshll.u32 %s974_s2, 4  ;;  %s40_s15 = int_to_ptr.vmem [resolvable:$true] %s39_s15 }
   0x5   :  { %20 = vsyncpa [#allocation3], 0  ;;  %s59_s18 = sshll.u32 %s976_s4, 4  ;;  %s492_s19 = scalar_lea.vmem %s40_s15, 64  ;;  %s60_s18 = int_to_ptr.vmem [resolvable:$true] %s59_s18 }
   0x6   :  { %p493_p0 = scmp.ne.s32.totalorder %s40_s15, %s492_s19  ;;  %p497_p1 = scmp.lt.s32.totalorder %s40_s15, %s40_s15 }
   0x7   :  { %p498_p2 = scmp.lt.s32.totalorder %s492_s19, %s492_s19 }
   0x9   :  { %p499_p3 = por %p498_p2, %p497_p1 }
   0xb   :  { %p500_p4 = pnand %p499_p3, %p493_p0 }
   0xd   :  { %503 = shalt.err (!%p500_p4)
}
   0xe   :  { %s634_s20 = smov [#allocation5]   ;;  %s504_s21 = scalar_lea.vmem %s60_s18, 64 }
   0xf   :  { %42 = dma.vmem_to_smem %s40_s15, 64, %s634_s20, [#allocation6]  }
  0x10   :  { %p505_p5 = scmp.ne.s32.totalorder %s60_s18, %s504_s21  ;;  %p509_p6 = scmp.lt.s32.totalorder %s60_s18, %s60_s18 }
  0x11   :  { %p510_p7 = scmp.lt.s32.totalorder %s504_s21, %s504_s21 }
  0x13   :  { %p511_p8 = por %p510_p7, %p509_p6 }
  0x15   :  { %p512_p9 = pnand %p511_p8, %p505_p5 }
  0x17   :  { %515 = shalt.err (!%p512_p9)
}
  0x18   :  { %s635_s2 = smov [#allocation8]   ;;  %s79_s23 = sshll.u32 %s978_s6, 4  ;;  %s80_s23 = int_to_ptr.vmem [resolvable:$true] %s79_s23 }
  0x19   :  { %62 = dma.vmem_to_smem %s60_s18, 64, %s635_s2, [#allocation9]  }
  0x1a   :  { %s99_s26 = sshll.u32 %s980_s8, 4  ;;  %s516_s27 = scalar_lea.vmem %s80_s23, 64  ;;  %s100_s26 = int_to_ptr.vmem [resolvable:$true] %s99_s26 }
  0x1b   :  { %p517_p10 = scmp.ne.s32.totalorder %s80_s23, %s516_s27  ;;  %p521_p11 = scmp.lt.s32.totalorder %s80_s23, %s80_s23 }
  0x1c   :  { %p522_p12 = scmp.lt.s32.totalorder %s516_s27, %s516_s27 }
  0x1e   :  { %p523_p13 = por %p522_p12, %p521_p11 }
  0x20   :  { %p524_p0 = pnand %p523_p13, %p517_p10 }
  0x22   :  { %527 = shalt.err (!%p524_p0)
}
  0x23   :  { %s636_s28 = smov [#allocation11]   ;;  %s528_s29 = scalar_lea.vmem %s100_s26, 64 }
  0x24   :  { %82 = dma.vmem_to_smem %s80_s23, 64, %s636_s28, [#allocation12]  }
  0x25   :  { %p529_p1 = scmp.ne.s32.totalorder %s100_s26, %s528_s29  ;;  %p533_p2 = scmp.lt.s32.totalorder %s100_s26, %s100_s26 }
  0x26   :  { %p534_p3 = scmp.lt.s32.totalorder %s528_s29, %s528_s29 }
  0x28   :  { %p535_p4 = por %p534_p3, %p533_p2 }
  0x2a   :  { %p536_p5 = pnand %p535_p4, %p529_p1 }
  0x2c   :  { %539 = shalt.err (!%p536_p5)
}
  0x2d   :  { %s637_s6 = smov [#allocation14]   ;;  %s29_s11 = sshll.u32 %s973_s1, 4  ;;  %s30_s11 = int_to_ptr.vmem [resolvable:$true] %s29_s11 }
  0x2e   :  { %102 = dma.vmem_to_smem %s100_s26, 64, %s637_s6, [#allocation15]  }
  0x2f   :  { %s49_s14 = sshll.u32 %s975_s3, 4  ;;  %s540_s15 = scalar_lea.vmem %s30_s11, 64  ;;  %s50_s14 = int_to_ptr.vmem [resolvable:$true] %s49_s14 }
  0x30   :  { %p541_p6 = scmp.ne.s32.totalorder %s30_s11, %s540_s15  ;;  %p545_p7 = scmp.lt.s32.totalorder %s30_s11, %s30_s11 }
  0x31   :  { %p546_p8 = scmp.lt.s32.totalorder %s540_s15, %s540_s15 }
  0x33   :  { %p547_p9 = por %p546_p8, %p545_p7 }
  0x35   :  { %p548_p10 = pnand %p547_p9, %p541_p6 }
  0x37   :  { %551 = shalt.err (!%p548_p10)
}
  0x38   :  { %s638_s16 = smov [#allocation2]   ;;  %s552_s17 = scalar_lea.vmem %s50_s14, 64 }
  0x39   :  { %32 = dma.vmem_to_smem %s30_s11, 64, %s638_s16, [#allocation4]  }
  0x3a   :  { %p553_p11 = scmp.ne.s32.totalorder %s50_s14, %s552_s17  ;;  %p557_p12 = scmp.lt.s32.totalorder %s50_s14, %s50_s14 }
  0x3b   :  { %p558_p13 = scmp.lt.s32.totalorder %s552_s17, %s552_s17 }
  0x3d   :  { %p559_p0 = por %p558_p13, %p557_p12 }
  0x3f   :  { %p560_p1 = pnand %p559_p0, %p553_p11 }
  0x41   :  { %563 = shalt.err (!%p560_p1)
}
  0x42   :  { %s639_s1 = smov [#allocation7]   ;;  %s69_s19 = sshll.u32 %s977_s5, 4  ;;  %s70_s19 = int_to_ptr.vmem [resolvable:$true] %s69_s19 }
  0x43   :  { %52 = dma.vmem_to_smem %s50_s14, 64, %s639_s1, [#allocation6]  }
  0x44   :  { %s89_s2 = sshll.u32 %s979_s7, 4  ;;  %s564_s4 = scalar_lea.vmem %s70_s19, 64  ;;  %s90_s2 = int_to_ptr.vmem [resolvable:$true] %s89_s2 }
  0x45   :  { %p565_p2 = scmp.ne.s32.totalorder %s70_s19, %s564_s4  ;;  %p569_p3 = scmp.lt.s32.totalorder %s70_s19, %s70_s19 }
  0x46   :  { %p570_p4 = scmp.lt.s32.totalorder %s564_s4, %s564_s4 }
  0x48   :  { %p571_p5 = por %p570_p4, %p569_p3 }
  0x4a   :  { %p572_p6 = pnand %p571_p5, %p565_p2 }
  0x4c   :  { %575 = shalt.err (!%p572_p6)
}
  0x4d   :  { %s640_s22 = smov [#allocation10]   ;;  %s576_s23 = scalar_lea.vmem %s90_s2, 64 }
  0x4e   :  { %72 = dma.vmem_to_smem %s70_s19, 64, %s640_s22, [#allocation9]  }
  0x4f   :  { %p577_p7 = scmp.ne.s32.totalorder %s90_s2, %s576_s23  ;;  %p581_p8 = scmp.lt.s32.totalorder %s90_s2, %s90_s2 }
  0x50   :  { %p582_p9 = scmp.lt.s32.totalorder %s576_s23, %s576_s23 }
  0x52   :  { %p583_p10 = por %p582_p9, %p581_p8 }
  0x54   :  { %p584_p11 = pnand %p583_p10, %p577_p7 }
  0x56   :  { %587 = shalt.err (!%p584_p11)
}
  0x57   :  { %s641_s5 = smov [#allocation13]   ;;  %s109_s25 = sshll.u32 %s981_s9, 4  ;;  %s110_s25 = int_to_ptr.vmem [resolvable:$true] %s109_s25 }
  0x58   :  { %92 = dma.vmem_to_smem %s90_s2, 64, %s641_s5, [#allocation12]  }
  0x59   :  { %s588_s26 = scalar_lea.vmem %s110_s25, 64  ;;  %p593_p13 = scmp.lt.s32.totalorder %s110_s25, %s110_s25 }
  0x5a   :  { %p589_p12 = scmp.ne.s32.totalorder %s110_s25, %s588_s26  ;;  %p594_p0 = scmp.lt.s32.totalorder %s588_s26, %s588_s26 }
  0x5c   :  { %p595_p1 = por %p594_p0, %p593_p13 }
  0x5e   :  { %p596_p2 = pnand %p595_p1, %p589_p12 }
  0x60   :  { %599 = shalt.err (!%p596_p2)
}
  0x61   :  { %s642_s27 = smov [#allocation16]  }
  0x62   :  { %112 = dma.vmem_to_smem %s110_s25, 64, %s642_s27, [#allocation15]  }
  0x63   :  { %622 = dma.done.wait [#allocation4], 64  }
  0x64   :  { %623 = vsyncadd [#allocation4], 4294967232 }
  0x65   :  { %624 = dma.done.wait [#allocation6], 128  }
  0x66   :  { %625 = vsyncadd [#allocation6], 4294967168 }
  0x67   :  { %626 = dma.done.wait [#allocation9], 128  }
  0x68   :  { %627 = vsyncadd [#allocation9], 4294967168 }
  0x69   :  { %628 = dma.done.wait [#allocation12], 128  }
  0x6a   :  { %629 = vsyncadd [#allocation12], 4294967168 }
  0x6b   :  { %630 = dma.done.wait [#allocation15], 128  }
  0x6c   :  { %631 = vsyncadd [#allocation15], 4294967168 }
  0x6d   :  { %140 = sfence }
  0x6e   :  { %s156_s9 = sld [smem:[#allocation2]]  ;;  %v141_v0 = vld [vmem:[%s972_s0] sm:$0x1]  ;;  %s428_s12 = sld [smem:[#allocation2 + $0x1]]  ;;  %v142_v1 = vld [vmem:[%s972_s0 + $0x1] sm:$0x1] }
  0x6f   :  { %s425_s28 = sld [smem:[#allocation2 + $0x80]]  ;;  %s429_s15 = sld [smem:[#allocation2 + $0x81]]  ;;  %v143_v2 = vld [vmem:[%s972_s0 + $0x2] sm:$0x1]  ;;  %v144_v3 = vld [vmem:[%s972_s0 + $0x3] sm:$0x1] }
  0x70   :  { %s426_s29 = sld [smem:[#allocation2 + $0x100]]  ;;  %s430_s16 = sld [smem:[#allocation2 + $0x101]]  ;;  %v145_v25 = vld [vmem:[%s972_s0 + $0x4] sm:$0x1]  ;;  %v780_v26 = vld [vmem:[%s972_s0 + $0x5] sm:$0x1] }
  0x71   :  { %s427_s6 = sld [smem:[#allocation2 + $0x180]]  ;;  %s737_s3 = sld [smem:[#allocation2 + $0x181]]  ;;  %v786_v31 = vld [vmem:[%s972_s0 + $0x6] sm:$0x1]  ;;  %v797_v36 = vld [vmem:[%s972_s0 + $0x7] sm:$0x1] }
  0x72   :  { %s729_s11 = sld [smem:[#allocation10]]  ;;  %s744_s21 = sld [smem:[#allocation2 + $0x2]] }
  0x73   :  { %s739_s18 = sld [smem:[#allocation10 + $0x80]]  ;;  %s746_s2 = sld [smem:[#allocation2 + $0x82]] }
  0x74   :  { %v157_v4 = vstv %s156_s9  ;;  %s748_s4 = sld [smem:[#allocation2 + $0x102]]  ;;  %s752_s23 = sld [smem:[#allocation5]]  ;;  %v176_v12 = vstv %s428_s12 }
  0x75   :  { %v160_v5 = vstv %s425_s28  ;;  %s750_s22 = sld [smem:[#allocation2 + $0x182]]  ;;  %v158_v6 = vmul.f32 %v157_v4, %v141_v0  ;;  %s754_s5 = sld [smem:[#allocation5 + $0x80]]  ;;  %v177_v14 = vmul.f32 %v176_v12, %v141_v0  ;;  %v179_v15 = vstv %s429_s15 }
  0x76   :  { %v161_v7 = vmul.f32 %v160_v5, %v142_v1  ;;  %v164_v8 = vstv %s426_s29  ;;  %s756_s7 = sld [smem:[#allocation5 + $0x100]]  ;;  %v183_v16 = vstv %s430_s16  ;;  %v180_v18 = vmul.f32 %v179_v15, %v142_v1  ;;  %s764_s26 = sld [smem:[#allocation5 + $0x1]] }
  0x77   :  { %v168_v9 = vstv %s427_s6  ;;  %v165_v10 = vmul.f32 %v164_v8, %v143_v2  ;;  %s758_s24 = sld [smem:[#allocation10 + $0x100]]  ;;  %v184_v19 = vmul.f32 %v183_v16, %v143_v2  ;;  %v187_v20 = vstv %s737_s3  ;;  %s766_s27 = sld [smem:[#allocation5 + $0x81]] }
  0x78   :  { %v169_v11 = vmul.f32 %v168_v9, %v144_v3  ;;  %v162_v13 = vadd.f32 %v161_v7, %v158_v6  ;;  %s760_s25 = sld [smem:[#allocation5 + $0x180]]  ;;  %v173_v17 = vstv %s729_s11  ;;  %v188_v22 = vmul.f32 %v187_v20, %v144_v3  ;;  %s770_s9 = sld [smem:[#allocation5 + $0x101]] }
  0x79   :  { %v196_v23 = vstv %s744_s21  ;;  %v199_v24 = vstv %s746_s2  ;;  %s772_s28 = sld [smem:[#allocation5 + $0x181]]  ;;  %v181_v27 = vadd.f32 %v180_v18, %v177_v14  ;;  %v192_v33 = vstv %s739_s18  ;;  %s790_s13 = sld [smem:[#allocation11]]  ;;  %v150_v14 = vld [vmem:[%s972_s0 + $0x9] sm:$0x1] }
  0x7a   :  { %v166_v21 = vadd.f32 %v165_v10, %v162_v13  ;;  %v197_v28 = vmul.f32 %v196_v23, %v141_v0  ;;  %v200_v29 = vmul.f32 %v199_v24, %v142_v1  ;;  %v203_v30 = vstv %s748_s4  ;;  %s792_s14 = sld [smem:[#allocation5 + $0x2]]  ;;  %s810_s18 = sld [smem:[#allocation11 + $0x80]]  ;;  %v149_v13 = vld [vmem:[%s972_s0 + $0x8] sm:$0x1]  ;;  %v872_v24 = vld [vmem:[%s972_s0 + $0xb] sm:$0x1] }
  0x7b   :  { %v204_v34 = vmul.f32 %v203_v30, %v143_v2  ;;  %v207_v35 = vstv %s750_s22  ;;  %v185_v37 = vadd.f32 %v184_v19, %v181_v27  ;;  %v217_v40 = vstv %s752_s23  ;;  %s800_s17 = sld [smem:[#allocation5 + $0x82]]  ;;  %s815_s19 = sld [smem:[#allocation7]]  ;;  %v858_v19 = vld [vmem:[%s972_s0 + $0xa] sm:$0x1] }
  0x7c   :  { %v170_v32 = vadd.f32 %v169_v11, %v166_v21  ;;  %v201_v38 = vadd.f32 %v200_v29, %v197_v28  ;;  %v208_v39 = vmul.f32 %v207_v35, %v144_v3  ;;  %v218_v42 = vmul.f32 %v217_v40, %v145_v25  ;;  %s804_s1 = sld [smem:[#allocation5 + $0x102]]  ;;  %s818_s20 = sld [smem:[#allocation11 + $0x100]] }
  0x7d   :  { %v220_v43 = vstv %s754_s5  ;;  %v224_v44 = vstv %s756_s7  ;;  %s806_s3 = sld [smem:[#allocation5 + $0x182]]  ;;  %v189_v45 = vadd.f32 %v188_v22, %v185_v37  ;;  %v212_v50 = vstv %s758_s24  ;;  %s820_s21 = sld [smem:[#allocation7 + $0x80]] }
  0x7e   :  { %v171_v41 = vmax.f32 %v170_v32, 0.0  ;;  %v205_v46 = vadd.f32 %v204_v34, %v201_v38  ;;  %v221_v47 = vmul.f32 %v220_v43, %v780_v26  ;;  %v225_v48 = vmul.f32 %v224_v44, %v786_v31  ;;  %s825_s2 = sld [smem:[#allocation7 + $0x100]]  ;;  %s834_s22 = sld [smem:[#allocation7 + $0x1]] }
  0x7f   :  { %v228_v51 = vstv %s760_s25  ;;  %v236_v52 = vstv %s764_s26  ;;  %v190_v53 = vmax.f32 %v189_v45, 0.0  ;;  %v239_v58 = vstv %s766_s27  ;;  %s827_s4 = sld [smem:[#allocation7 + $0x180]]  ;;  %s836_s23 = sld [smem:[#allocation7 + $0x81]] }
  0x80   :  { %v174_v49 = vmul.f32 %v173_v17, %v171_v41  ;;  %v209_v54 = vadd.f32 %v208_v39, %v205_v46  ;;  %v222_v55 = vadd.f32 %v221_v47, %v218_v42  ;;  %v229_v56 = vmul.f32 %v228_v51, %v797_v36  ;;  %s838_s5 = sld [smem:[#allocation13]]  ;;  %s843_s7 = sld [smem:[#allocation7 + $0x101]] }
  0x81   :  { %v237_v57 = vmul.f32 %v236_v52, %v145_v25  ;;  %v243_v59 = vstv %s770_s9  ;;  %v247_v60 = vstv %s772_s28  ;;  %v193_v61 = vmul.f32 %v192_v33, %v190_v53  ;;  %s845_s24 = sld [smem:[#allocation7 + $0x181]]  ;;  %s865_s6 = sld [smem:[#allocation7 + $0x2]] }
  0x82   :  { %v210_v62 = vmax.f32 %v209_v54, 0.0  ;;  %v226_v63 = vadd.f32 %v225_v48, %v222_v55  ;;  %v240_v0 = vmul.f32 %v239_v58, %v780_v26  ;;  %v233_v1 = vstv %s790_s13  ;;  %s867_s8 = sld [smem:[#allocation7 + $0x82]]  ;;  %s875_s12 = sld [smem:[#allocation13 + $0x80]] }
  0x83   :  { %v244_v2 = vmul.f32 %v243_v59, %v786_v31  ;;  %v248_v3 = vmul.f32 %v247_v60, %v797_v36  ;;  %v256_v4 = vstv %s792_s14  ;;  %v194_v5 = vadd.f32 %v193_v61, %v174_v49  ;;  %s880_s13 = sld [smem:[#allocation7 + $0x102]]  ;;  %s889_s15 = sld [smem:[#allocation8]] }
  0x84   :  { %v213_v6 = vmul.f32 %v212_v50, %v210_v62  ;;  %v230_v7 = vadd.f32 %v229_v56, %v226_v63  ;;  %v241_v8 = vadd.f32 %v240_v0, %v237_v57  ;;  %v257_v9 = vmul.f32 %v256_v4, %v145_v25  ;;  %s882_s14 = sld [smem:[#allocation7 + $0x182]]  ;;  %s891_s16 = sld [smem:[#allocation8 + $0x80]]  ;;  %v153_v57 = vld [vmem:[%s972_s0 + $0xc] sm:$0x1]  ;;  %v154_v62 = vld [vmem:[%s972_s0 + $0xd] sm:$0x1] }
  0x85   :  { %v259_v10 = vstv %s800_s17  ;;  %v263_v11 = vstv %s804_s1  ;;  %v267_v12 = vstv %s806_s3  ;;  %v252_v17 = vstv %s810_s18  ;;  %s893_s17 = sld [smem:[#allocation13 + $0x100]]  ;;  %s901_s3 = sld [smem:[#allocation8 + $0x1]] }
  0x86   :  { %v231_v15 = vmax.f32 %v230_v7, 0.0  ;;  %v245_v16 = vadd.f32 %v244_v2, %v241_v8  ;;  %v260_v18 = vmul.f32 %v259_v10, %v780_v26  ;;  %v860_v20 = vadd.f32 %v213_v6, %v194_v5  ;;  %s898_s1 = sld [smem:[#allocation8 + $0x100]]  ;;  %s903_s18 = sld [smem:[#allocation8 + $0x81]]  ;;  %v155_v7 = vld [vmem:[%s972_s0 + $0xe] sm:$0x1] }
  0x87   :  { %v264_v21 = vmul.f32 %v263_v11, %v786_v31  ;;  %v268_v22 = vmul.f32 %v267_v12, %v797_v36  ;;  %v277_v23 = vstv %s815_s19  ;;  %v272_v28 = vstv %s818_s20  ;;  %s908_s19 = sld [smem:[#allocation14]] }
  0x88   :  { %v234_v25 = vmul.f32 %v233_v1, %v231_v15  ;;  %v249_v26 = vadd.f32 %v248_v3, %v245_v16  ;;  %v261_v27 = vadd.f32 %v260_v18, %v257_v9  ;;  %v278_v29 = vmul.f32 %v277_v23, %v149_v13  ;;  %s934_s26 = sld [smem:[#allocation14 + $0x80]] }
  0x89   :  { %v280_v30 = vstv %s820_s21  ;;  %v284_v31 = vstv %s825_s2  ;;  %v288_v32 = vstv %s827_s4  ;;  %v215_v37 = vmax.f32 %v860_v20, 0.0  ;;  %s913_s2 = sld [smem:[#allocation8 + $0x101]]  ;;  %s915_s4 = sld [smem:[#allocation8 + $0x2]] }
  0x8a   :  { %v250_v33 = vmax.f32 %v249_v26, 0.0  ;;  %v265_v34 = vadd.f32 %v264_v21, %v261_v27  ;;  %v281_v35 = vmul.f32 %v280_v30, %v150_v14  ;;  %v285_v36 = vmul.f32 %v284_v31, %v858_v19  ;;  %s937_s27 = sld [smem:[#allocation16]] }
  0x8b   :  { %v289_v38 = vmul.f32 %v288_v32, %v872_v24  ;;  %v296_v39 = vstv %s834_s22  ;;  %v299_v40 = vstv %s836_s23  ;;  %v293_v45 = vstv %s838_s5  ;;  %s924_s5 = sld [smem:[#allocation8 + $0x82]]  ;;  %s939_s9 = sld [smem:[#allocation16 + $0x80]] }
  0x8c   :  { %v253_v41 = vmul.f32 %v252_v17, %v250_v33  ;;  %v269_v42 = vadd.f32 %v268_v22, %v265_v34  ;;  %v282_v43 = vadd.f32 %v281_v35, %v278_v29  ;;  %v297_v44 = vmul.f32 %v296_v39, %v149_v13  ;;  %s947_s0 = sld [smem:[#allocation14 + $0x100]] }
  0x8d   :  { %v300_v46 = vmul.f32 %v299_v40, %v150_v14  ;;  %v303_v47 = vstv %s843_s7  ;;  %v307_v48 = vstv %s845_s24  ;;  %v316_v55 = vstv %s865_s6  ;;  %s926_s7 = sld [smem:[#allocation8 + $0x102]]  ;;  %s949_s28 = sld [smem:[#allocation16 + $0x100]] }
  0x8e   :  { %v254_v49 = vadd.f32 %v253_v41, %v234_v25  ;;  %v270_v50 = vmax.f32 %v269_v42, 0.0  ;;  %v286_v51 = vadd.f32 %v285_v36, %v282_v43  ;;  %v304_v52 = vmul.f32 %v303_v47, %v858_v19  ;;  %s476_s29 = sld [smem:[#allocation16 + $0x180]]  ;;  %s643_s6 = smov [#allocation17]  }
  0x8f   :  { %v301_v53 = vadd.f32 %v300_v46, %v297_v44  ;;  %v308_v54 = vmul.f32 %v307_v48, %v872_v24  ;;  %v319_v56 = vstv %s867_s8  ;;  %v317_v60 = vmul.f32 %v316_v55, %v149_v13  ;;  %s412_s8 = sshll.u32 %s643_s6, 4  ;;  %s413_s8 = int_to_ptr.vmem [resolvable:$true] %s412_s8 }
  0x90   :  { %v273_v58 = vmul.f32 %v272_v28, %v270_v50  ;;  %v290_v59 = vadd.f32 %v289_v38, %v286_v51  ;;  %v320_v61 = vmul.f32 %v319_v56, %v150_v14  ;;  %v312_v0 = vstv %s875_s12  ;;  %s600_s30 = scalar_lea.vmem %s413_s8, 16  ;;  %s604_s11 = scalar_lea.vmem %s413_s8, 32 }
  0x91   :  { %v305_v63 = vadd.f32 %v304_v52, %v301_v53  ;;  %v323_v1 = vstv %s880_s13  ;;  %v327_v2 = vstv %s882_s14  ;;  %v337_v10 = vstv %s889_s15  ;;  %p601_p3 = scmp.ne.s32.totalorder %s413_s8, %s600_s30  ;;  %p605_p4 = scmp.lt.s32.totalorder %s413_s8, %s413_s8 }
  0x92   :  { %v274_v3 = vadd.f32 %v273_v58, %v254_v49  ;;  %v291_v4 = vmax.f32 %v290_v59, 0.0  ;;  %v321_v5 = vadd.f32 %v320_v61, %v317_v60  ;;  %v324_v6 = vmul.f32 %v323_v1, %v858_v19  ;;  %p606_p5 = scmp.lt.s32.totalorder %s604_s11, %s600_s30 }
  0x93   :  { %v309_v8 = vadd.f32 %v308_v54, %v305_v63  ;;  %v328_v9 = vmul.f32 %v327_v2, %v872_v24  ;;  %v340_v11 = vstv %s891_s16  ;;  %v332_v14 = vstv %s893_s17 }
  0x94   :  { %v275_v12 = vmax.f32 %v274_v3, 0.0  ;;  %v325_v13 = vadd.f32 %v324_v6, %v321_v5  ;;  %v338_v15 = vmul.f32 %v337_v10, %v153_v57  ;;  %v294_v16 = vmul.f32 %v293_v45, %v291_v4  ;;  %p607_p6 = por %p606_p5, %p605_p4 }
  0x95   :  { %v310_v17 = vmax.f32 %v309_v8, 0.0  ;;  %v341_v18 = vmul.f32 %v340_v11, %v154_v62  ;;  %v344_v19 = vstv %s898_s1  ;;  %v352_v23 = vstv %s901_s3 }
  0x96   :  { %v329_v21 = vadd.f32 %v328_v9, %v325_v13  ;;  %v345_v22 = vmul.f32 %v344_v19, %v155_v7  ;;  %v355_v24 = vstv %s903_s18  ;;  %v353_v27 = vmul.f32 %v352_v23, %v153_v57  ;;  %p608_p7 = pnand %p607_p6, %p601_p3 }
  0x97   :  { %v313_v25 = vmul.f32 %v312_v0, %v310_v17  ;;  %v342_v26 = vadd.f32 %v341_v18, %v338_v15  ;;  %v356_v28 = vmul.f32 %v355_v24, %v154_v62  ;;  %v349_v30 = vstv %s908_s19 }
  0x98   :  { %v330_v29 = vmax.f32 %v329_v21, 0.0  ;;  %v359_v31 = vstv %s913_s2  ;;  %v368_v32 = vstv %s915_s4  ;;  %v371_v40 = vstv %s924_s5 }
  0x99   :  { %v314_v33 = vadd.f32 %v313_v25, %v294_v16  ;;  %v346_v34 = vadd.f32 %v345_v22, %v342_v26  ;;  %v357_v35 = vadd.f32 %v356_v28, %v353_v27  ;;  %v360_v36 = vmul.f32 %v359_v31, %v155_v7 }
  0x9a   :  { %v333_v38 = vmul.f32 %v332_v14, %v330_v29  ;;  %v369_v39 = vmul.f32 %v368_v32, %v153_v57  ;;  %v375_v41 = vstv %s926_s7  ;;  %v372_v44 = vmul.f32 %v371_v40, %v154_v62 }
  0x9b   :  { %v347_v42 = vmax.f32 %v346_v34, 0.0  ;;  %v361_v43 = vadd.f32 %v360_v36, %v357_v35  ;;  %v376_v45 = vmul.f32 %v375_v41, %v155_v7  ;;  %v364_v47 = vstv %s934_s26 }
  0x9c   :  { %v334_v46 = vadd.f32 %v333_v38, %v314_v33  ;;  %v385_v48 = vstv %s937_s27  ;;  %v388_v49 = vstv %s939_s9  ;;  %v373_v52 = vadd.f32 %v372_v44, %v369_v39 }
  0x9d   :  { %v350_v50 = vmul.f32 %v349_v30, %v347_v42  ;;  %v362_v51 = vmax.f32 %v361_v43, 0.0  ;;  %v386_v53 = vmul.f32 %v385_v48, %v215_v37  ;;  %v389_v57 = vmul.f32 %v388_v49, %v275_v12 }
  0x9e   :  { %v335_v54 = vmax.f32 %v334_v46, 0.0  ;;  %v377_v56 = vadd.f32 %v376_v45, %v373_v52  ;;  %v380_v58 = vstv %s947_s0  ;;  %v392_v59 = vstv %s949_s28 }
  0x9f   :  { %v365_v55 = vmul.f32 %v364_v47, %v362_v51  ;;  %v390_v63 = vadd.f32 %v389_v57, %v386_v53  ;;  %v396_v2 = vstv %s476_s29 }
  0xa0   :  { %v378_v61 = vmax.f32 %v377_v56, 0.0  ;;  %v393_v0 = vmul.f32 %v392_v59, %v335_v54 }
  0xa1   :  { %v366_v60 = vadd.f32 %v365_v55, %v350_v50 }
  0xa2   :  { %v381_v62 = vmul.f32 %v380_v58, %v378_v61  ;;  %v394_v4 = vadd.f32 %v393_v0, %v390_v63 }
  0xa4   :  { %v382_v1 = vadd.f32 %v381_v62, %v366_v60 }
  0xa6   :  { %v383_v3 = vmax.f32 %v382_v1, 0.0 }
  0xa8   :  { %v397_v5 = vmul.f32 %v396_v2, %v383_v3 }
  0xaa   :  { %v398_v6 = vadd.f32 %v397_v5, %v394_v4 }
  0xac   :  { %v477_v20 = vmul.f32 -1.442695, %v398_v6 }
  0xae   :  { %488 = vpow2.f32 %v477_v20 }
  0xb8   :  { %v489_v37 = vpop.eup %488 }
  0xb9   :  { %v402_v7 = vadd.f32 1.0, %v489_v37 }
  0xbb   :  { %490 = vrcp.f32 %v402_v7 }
  0xc5   :  { %v491_v8 = vpop.eup %490 }
  0xc6   :  { %405 = vst [vmem:[#allocation17] sm:$0x1] %v491_v8 }
  0xc7   :  { %611 = shalt.err (!%p608_p7)
}
  0xc8   :  { %s612_s14 = scalar_lea.hbm %s982_s10, 16 }
  0xc9   :  { %p613_p8 = scmp.ne.s32.totalorder %s982_s10, %s612_s14  ;;  %p616_p9 = scmp.lt.u32.totalorder %s612_s14, %s982_s10 }
  0xcb   :  { %p618_p10 = pnand %p616_p9, %p613_p8 }
  0xcd   :  { %621 = shalt.err (!%p618_p10)
}
  0xce   :  { %415 = dma.vmem_to_hbm [thread:$0]  %s413_s8, 16, %s982_s10, [#allocation3]  }
  0xcf   :  { %632 = dma.done.wait [#allocation3], 16  }
  0xd0   :  { %633 = vsyncadd [#allocation3], 4294967280 }
  0xd1   :  { %419 = vsyncpa [#allocation3], 1 }
  0xd2   :  { %420 = vsyncpa [#allocation4], 1 }
  0xd3   :  { %421 = vsyncpa [#allocation6], 1 }
  0xd4   :  { %422 = vsyncpa [#allocation9], 1 }
  0xd5   :  { %423 = vsyncpa [#allocation12], 1 }
  0xd6   :  { %424 = vsyncpa [#allocation15], 1 }

</bundles_post_ra>
